<compile_context>
chip_gen: v6e
topology: v6e:2x2x1
jax: 0.10.0
libtpu: 0.0.40
codegen_flags: <defaults>
</compile_context>

<pallas_src>
import functools

import jax
import jax.numpy as jnp
from jax.experimental import pallas as pl
from jax.experimental.pallas import tpu as pltpu


def _round_up(x, m):
    return (x + m - 1) // m * m


def _pad2d(x, rows, cols):
    if x.shape == (rows, cols):
        return x
    out = jnp.zeros((rows, cols), x.dtype)
    return out.at[: x.shape[0], : x.shape[1]].set(x)


def _dd_kernel(u_ref, laug_ref, llhalf_ref, b_ref, out_ref, acc_s, acc_uu, *,
               m_col, l_resident, tile_d):
    """One (N-tile, D-tile) grid step.

    u_ref     : (TN, TD)           U tile (MXU dtype)
    laug_ref  : (D_pad, M_pad) if l_resident else (TD, M_pad)
                [labels^T | density weight | zero pad], MXU dtype
    llhalf_ref: (1, M_pad)         0.5*||l||^2 per real label, +inf elsewhere
    b_ref     : (1,)               density bias, SMEM scalar
    out_ref   : (TN, 1)            dd output block (written on last D tile)
    acc_s     : (TN, M_pad) f32    accumulates U @ L_aug over D tiles
    acc_uu    : (TN, 1)     f32    accumulates ||u||^2 over D tiles
    """
    k = pl.program_id(1)

    @pl.when(k == 0)
    def _init():
        acc_s[...] = jnp.zeros_like(acc_s)
        acc_uu[...] = jnp.zeros_like(acc_uu)

    u = u_ref[...]                                      # (TN, TD)
    if l_resident:
        off = pl.multiple_of(k * tile_d, tile_d)
        l = laug_ref[pl.ds(off, tile_d), :]             # (TD, M_pad) view of resident L
    else:
        l = laug_ref[...]                               # (TD, M_pad) streamed tile
    # Canonical MXU feed: (TN, TD) @ (TD, M_pad) -> f32 accumulator.
    acc_s[...] += jnp.dot(u, l, preferred_element_type=jnp.float32)
    uf = u.astype(jnp.float32)
    acc_uu[...] += jnp.sum(uf * uf, axis=-1, keepdims=True)

    @pl.when(k == pl.num_programs(1) - 1)
    def _finalize():
        s = acc_s[...]                                  # (TN, M_pad) f32
        uu = acc_uu[...]                                # (TN, 1)     f32
        llhalf = llhalf_ref[...]                        # (1, M_pad)  f32 (+inf masks)
        # min_l ||u-l||^2 = ||u||^2 + 2*min_l(0.5||l||^2 - u.l); +inf excludes
        # the density / padding columns from the min.
        mneg = jnp.min(llhalf - s, axis=-1, keepdims=True)          # (TN, 1)
        d2 = jnp.maximum(uu + 2.0 * mneg, 0.0)
        min_dist = jnp.sqrt(d2)
        # Density score = static column m_col of the fused matmul + SMEM bias.
        dens = s[:, m_col:m_col + 1] + b_ref[0]
        # exp(dens + log(d + eps)) == (d + eps) * exp(dens)  (saves one log).
        out_ref[...] = (min_dist + 1e-18) * jnp.exp(dens)


def diversity_density_cached(pred, U_z, L_z, w, b, *, normalize=False,
                             tile_n=512, tile_d=2048,
                             l_resident_bytes=8 * 1024 * 1024,
                             use_bf16_mxu=False):
    """JAX wrapper mirroring DiversityDensityCached.forward(pred, U_z).

    pred is unused (as in the PyTorch module). U_z, L_z may be NCHW; they are
    flattened to (N, D) / (M, D). `density` is assumed to be a linear scorer
    with weight w (D, 1) and bias b.
    """
    del pred  # unused by the reference forward
    N = U_z.shape[0]
    M = L_z.shape[0]
    U = U_z.reshape(N, -1)
    L = L_z.reshape(M, -1)
    D = U.shape[1]
    assert L.shape[1] == D
    assert M >= 1, "DiversityDensityCached kernel assumes a non-empty labeled pool"

    in_dtype = U.dtype
    mxu_dtype = jnp.bfloat16 if use_bf16_mxu else in_dtype
    itemsize = jnp.dtype(mxu_dtype).itemsize

    # Fuse density weight as one extra column of the (pre-transposed) label
    # matrix: S = U @ [L^T | w]  ->  columns 0..M-1 are u.l, column M is dens.
    L_T = jnp.swapaxes(L, 0, 1)                                   # (D, M)
    L_aug_T = jnp.concatenate(
        [L_T.astype(mxu_dtype), w.reshape(D, 1).astype(mxu_dtype)], axis=1)

    # --- tiling / padding (MXU / lane aligned) ---
    M_pad = _round_up(M + 1, 128)                 # lane axis of the weight tile
    D_pad128 = _round_up(D, 128)                  # K always lane-aligned
    TD = min(_round_up(tile_d, 128), D_pad128)
    D_pad = _round_up(D, TD)
    sub = {1: 32, 2: 16, 4: 8}.get(itemsize, 8)   # sublane packing of U tile
    TN = min(_round_up(tile_n, sub), _round_up(N, sub))
    N_pad = _round_up(N, TN)

    U_p = _pad2d(U.astype(mxu_dtype), N_pad, D_pad)
    L_p = _pad2d(L_aug_T, D_pad, M_pad)

    # 0.5*||l||^2 row (hoisted, f32); +inf on density + padding columns so they
    # can never win the min.
    llhalf = 0.5 * jnp.sum(L.astype(jnp.float32) ** 2, axis=-1)   # (M,)
    ll_row = jnp.full((1, M_pad), jnp.inf, jnp.float32).at[0, :M].set(llhalf)

    b_smem = jnp.asarray(b, jnp.float32).reshape(1)               # SMEM scalar

    grid = (N_pad // TN, D_pad // TD)

    # L_aug residency: keep the whole (D_pad, M_pad) matrix in VMEM when small,
    # removing the grid[0]-1 HBM re-streams of the label matrix.
    l_bytes = M_pad * D_pad * itemsize
    l_resident = l_bytes <= l_resident_bytes
    if l_resident:
        l_spec = pl.BlockSpec((D_pad, M_pad), lambda n, k: (0, 0))
    else:
        l_spec = pl.BlockSpec((TD, M_pad), lambda n, k: (k, 0))

    # VMEM budget (double-buffered U, resident-or-streamed L, scratch, output).
    vmem_need = (2 * TN * TD * itemsize
                 + (l_bytes if l_resident else 2 * TD * M_pad * itemsize)
                 + 2 * M_pad * 4
                 + TN * M_pad * 4 + TN * 4
                 + 2 * TN * 4)
    vmem_limit = int(min(max(vmem_need * 5 // 4 + (2 << 20), 32 << 20), 64 << 20))

    kernel = functools.partial(_dd_kernel, m_col=M, l_resident=l_resident, tile_d=TD)
    l_reads = 1 if l_resident else grid[0]

    out = pl.pallas_call(
        kernel,
        out_shape=jax.ShapeDtypeStruct((N_pad, 1), jnp.float32),
        grid_spec=pltpu.PrefetchScalarGridSpec(
            num_scalar_prefetch=0,
            grid=grid,
            in_specs=[
                pl.BlockSpec((TN, TD), lambda n, k: (n, k)),        # U tile
                l_spec,                                             # L_aug^T
                pl.BlockSpec((1, M_pad), lambda n, k: (0, 0)),      # 0.5||l||^2 row
                pl.BlockSpec(memory_space=pltpu.MemorySpace.SMEM),  # bias scalar
            ],
            out_specs=pl.BlockSpec((TN, 1), lambda n, k: (n, 0)),
            scratch_shapes=[
                pltpu.VMEM((TN, M_pad), jnp.float32),   # cross + density accumulator
                pltpu.VMEM((TN, 1), jnp.float32),       # ||u||^2 accumulator
            ],
        ),
        compiler_params=pltpu.CompilerParams(
            # N tiles are independent -> megacore/2-TC sharding; D is a reduction.
            dimension_semantics=("parallel", "arbitrary"),
            vmem_limit_bytes=vmem_limit,
        ),
        cost_estimate=pl.CostEstimate(
            flops=2 * N_pad * M_pad * D_pad + 2 * N_pad * D_pad,
            transcendentals=2 * N_pad,
            bytes_accessed=(N_pad * D_pad + l_reads * M_pad * D_pad) * itemsize
            + M_pad * 4 + N_pad * 4,
        ),
    )(U_p, L_p, ll_row, b_smem)

    dd = out[:N, 0]                                   # drop N padding
    if normalize:
        # Global reduction kept out of the kernel (preserves N-parallelism).
        dd = dd - jnp.min(dd)
        dd = dd / (jnp.max(dd) + 1e-18)
    return dd


def _reference(U_z, L_z, w, b, *, normalize=False):
    """Pure-JAX reference of the same forward pass for a sanity check."""
    N = U_z.shape[0]
    U = U_z.reshape(N, -1).astype(jnp.float32)
    L = L_z.reshape(L_z.shape[0], -1).astype(jnp.float32)
    diff = L[None, :, :] - U[:, None, :]                              # (N, M, D)
    dists = jnp.min(jnp.sqrt(jnp.sum(diff * diff, axis=-1)), axis=-1)  # (N,)
    div = jnp.log(dists + 1e-18)
    dens = (U @ w.astype(jnp.float32))[:, 0] + jnp.asarray(b, jnp.float32).reshape(())
    dd = jnp.exp(dens + div)
    if normalize:
        dd = dd - jnp.min(dd)
        dd = dd / (jnp.max(dd) + 1e-18)
    return dd


if __name__ == "__main__":
    key = jax.random.PRNGKey(0)

    # --- small test: single grid step, shapes consistent with the module ---
    k_u, k_l, k_p, k_w = jax.random.split(key, 4)
    N, M, C, H, W = 16, 8, 4, 2, 4          # D = 32
    U_z = jax.random.normal(k_u, (N, C, H, W), dtype=jnp.float32)
    L_z = jax.random.normal(k_l, (M, C, H, W), dtype=jnp.float32)
    pred = jax.random.normal(k_p, (N, 10), dtype=jnp.float32)  # unused, as in torch
    D = C * H * W
    w = 0.01 * jax.random.normal(k_w, (D, 1), dtype=jnp.float32)
    b = jnp.full((1, 1), -0.1, dtype=jnp.float32)

    out = diversity_density_cached(pred, U_z, L_z, w, b, normalize=True)
    out = jax.block_until_ready(out)
    ref = _reference(U_z, L_z, w, b, normalize=True)
    assert out.shape == (N,)
    assert jnp.allclose(out, ref, atol=1e-5, rtol=1e-5), (out, ref)

    # --- medium test: default (large) tiles, resident L, single K tile ---
    k_u2, k_l2, k_w2 = jax.random.split(jax.random.PRNGKey(1), 3)
    N2, M2, C2, H2, W2 = 300, 12, 8, 10, 8   # D = 640
    U_z2 = jax.random.normal(k_u2, (N2, C2, H2, W2), dtype=jnp.float32)
    L_z2 = jax.random.normal(k_l2, (M2, C2, H2, W2), dtype=jnp.float32)
    D2 = C2 * H2 * W2
    w2 = 0.01 * jax.random.normal(k_w2, (D2, 1), dtype=jnp.float32)
    b2 = jnp.full((1, 1), -0.1, dtype=jnp.float32)
    ref2 = _reference(U_z2, L_z2, w2, b2, normalize=True)

    out2 = diversity_density_cached(None, U_z2, L_z2, w2, b2, normalize=True)
    out2 = jax.block_until_ready(out2)
    assert out2.shape == (N2,)
    assert jnp.allclose(out2, ref2, atol=1e-4, rtol=1e-4), (out2, ref2)

    # --- same data, small tiles: exercises N/D multi-tiling + resident-L slicing ---
    out3 = diversity_density_cached(None, U_z2, L_z2, w2, b2, normalize=True,
                                    tile_n=128, tile_d=256)
    out3 = jax.block_until_ready(out3)
    assert jnp.allclose(out3, ref2, atol=1e-4, rtol=1e-4), (out3, ref2)

    # --- streamed-L fallback path (l_resident_bytes=0) ---
    out4 = diversity_density_cached(None, U_z2, L_z2, w2, b2, normalize=True,
                                    tile_n=128, tile_d=256, l_resident_bytes=0)
    out4 = jax.block_until_ready(out4)
    assert jnp.allclose(out4, ref2, atol=1e-4, rtol=1e-4), (out4, ref2)

    # --- optional bf16 MXU path (fast path; looser tolerance by construction) ---
    out5 = diversity_density_cached(None, U_z2, L_z2, w2, b2, normalize=True,
                                    use_bf16_mxu=True)
    out5 = jax.block_until_ready(out5)
    assert out5.shape == (N2,)
    assert bool(jnp.all(jnp.isfinite(out5)))
    assert jnp.allclose(out5, ref2, atol=1e-1), (out5, ref2)

    print("KERNEL_OK")
</pallas_src>

<mosaic_0001>
module attributes {stable_mosaic.version = 11 : i64} {
  func.func @_dd_kernel(%arg0: i32, %arg1: i32, %arg2: memref<16x128xf32, #tpu.memory_space<vmem>>, %arg3: memref<128x128xf32, #tpu.memory_space<vmem>>, %arg4: memref<1x128xf32, #tpu.memory_space<vmem>>, %arg5: memref<1xf32, #tpu.memory_space<smem>>, %arg6: memref<16x1xf32, #tpu.memory_space<vmem>>, %arg7: memref<16x128xf32, #tpu.memory_space<vmem>>, %arg8: memref<16x1xf32, #tpu.memory_space<vmem>>) attributes {dimension_semantics = [#tpu.dimension_semantics<parallel>, #tpu.dimension_semantics<arbitrary>], iteration_bounds = array<i64: 1, 1>, scalar_prefetch = 0 : i64, scratch_operands = 2 : i64, tpu.core_type = #tpu.core_type<tc>, window_params = [{transform_indices = @transform_0, window_bounds = array<i64: 16, 128>}, {pipeline_mode = #tpu.pipeline_mode<synchronous>, transform_indices = @transform_1, window_bounds = array<i64: 128, 128>}, {pipeline_mode = #tpu.pipeline_mode<synchronous>, transform_indices = @transform_2, window_bounds = array<i64: 1, 128>}, {transform_indices = @transform_3, window_bounds = array<i64: 1>}, {transform_indices = @transform_4, window_bounds = array<i64: 16, 1>}]} {
    %c0_i32 = arith.constant 0 : i32
    %0 = arith.cmpi eq, %arg1, %c0_i32 : i32
    %1 = arith.extui %0 : i1 to i32
    %c0_i32_0 = arith.constant 0 : i32
    %2 = arith.cmpi ne, %1, %c0_i32_0 : i32
    scf.if %2 {
      %cst_14 = arith.constant 0.000000e+00 : f32
      %21 = vector.broadcast %cst_14 : f32 to vector<16x128xf32>
      %c0_15 = arith.constant 0 : index
      %c0_16 = arith.constant 0 : index
      %22 = vector.load %arg7[%c0_15, %c0_16] : memref<16x128xf32, #tpu.memory_space<vmem>>, vector<16x128xf32>
      tpu.vector_store %arg7[%c0_15, %c0_16], %21 {strides = array<i32>} : memref<16x128xf32, #tpu.memory_space<vmem>>, vector<16x128xf32>,
      %cst_17 = arith.constant 0.000000e+00 : f32
      %23 = vector.broadcast %cst_17 : f32 to vector<16x1xf32>
      %c0_18 = arith.constant 0 : index
      %c0_19 = arith.constant 0 : index
      %24 = vector.load %arg8[%c0_18, %c0_19] : memref<16x1xf32, #tpu.memory_space<vmem>>, vector<16x1xf32>
      tpu.vector_store %arg8[%c0_18, %c0_19], %23 {strides = array<i32>} : memref<16x1xf32, #tpu.memory_space<vmem>>, vector<16x1xf32>,
    } else {
    }
    %c0 = arith.constant 0 : index
    %c0_1 = arith.constant 0 : index
    %3 = vector.load %arg2[%c0, %c0_1] : memref<16x128xf32, #tpu.memory_space<vmem>>, vector<16x128xf32>
    %c128_i32 = arith.constant 128 : i32
    %4 = arith.muli %arg1, %c128_i32 : i32
    %5 = tpu.assume_multiple %4, 128 : i32
    %6 = arith.index_cast %5 : i32 to index
    %c0_2 = arith.constant 0 : index
    %7 = vector.load %arg3[%6, %c0_2] : memref<128x128xf32, #tpu.memory_space<vmem>>, vector<128x128xf32>
    %c0_3 = arith.constant 0 : index
    %c0_4 = arith.constant 0 : index
    %8 = vector.load %arg7[%c0_3, %c0_4] : memref<16x128xf32, #tpu.memory_space<vmem>>, vector<16x128xf32>
    %cst = arith.constant dense<0.000000e+00> : vector<16x128xf32>
    %9 = tpu.matmul %3, %7, %cst {dimension_numbers = #tpu.dot_dimension_numbers<[1], [0], [0], [1], [0, 0, 1, 1], [], []>} : vector<16x128xf32>, vector<128x128xf32>, vector<16x128xf32> -> vector<16x128xf32>
    %10 = arith.addf %8, %9 : vector<16x128xf32>
    %c0_5 = arith.constant 0 : index
    %c0_6 = arith.constant 0 : index
    %11 = vector.load %arg7[%c0_5, %c0_6] : memref<16x128xf32, #tpu.memory_space<vmem>>, vector<16x128xf32>
    tpu.vector_store %arg7[%c0_5, %c0_6], %10 {strides = array<i32>} : memref<16x128xf32, #tpu.memory_space<vmem>>, vector<16x128xf32>,
    %c0_7 = arith.constant 0 : index
    %c0_8 = arith.constant 0 : index
    %12 = vector.load %arg8[%c0_7, %c0_8] : memref<16x1xf32, #tpu.memory_space<vmem>>, vector<16x1xf32>
    %13 = arith.mulf %3, %3 : vector<16x128xf32>
    %cst_9 = arith.constant dense<0.000000e+00> : vector<16xf32>
    %14 = vector.multi_reduction <add>, %13, %cst_9 [1] : vector<16x128xf32> to vector<16xf32>
    %15 = vector.shape_cast %14 : vector<16xf32> to vector<16x1xf32>
    %16 = arith.addf %12, %15 : vector<16x1xf32>
    %c0_10 = arith.constant 0 : index
    %c0_11 = arith.constant 0 : index
    %17 = vector.load %arg8[%c0_10, %c0_11] : memref<16x1xf32, #tpu.memory_space<vmem>>, vector<16x1xf32>
    tpu.vector_store %arg8[%c0_10, %c0_11], %16 {strides = array<i32>} : memref<16x1xf32, #tpu.memory_space<vmem>>, vector<16x1xf32>,
    %c0_i32_12 = arith.constant 0 : i32
    %18 = arith.cmpi eq, %arg1, %c0_i32_12 : i32
    %19 = arith.extui %18 : i1 to i32
    %c0_i32_13 = arith.constant 0 : i32
    %20 = arith.cmpi ne, %19, %c0_i32_13 : i32
    scf.if %20 {
      %c0_14 = arith.constant 0 : index
      %c0_15 = arith.constant 0 : index
      %21 = vector.load %arg7[%c0_14, %c0_15] : memref<16x128xf32, #tpu.memory_space<vmem>>, vector<16x128xf32>
      %c0_16 = arith.constant 0 : index
      %c0_17 = arith.constant 0 : index
      %22 = vector.load %arg8[%c0_16, %c0_17] : memref<16x1xf32, #tpu.memory_space<vmem>>, vector<16x1xf32>
      %c0_18 = arith.constant 0 : index
      %c0_19 = arith.constant 0 : index
      %23 = vector.load %arg4[%c0_18, %c0_19] : memref<1x128xf32, #tpu.memory_space<vmem>>, vector<1x128xf32>
      %24 = vector.broadcast %23 : vector<1x128xf32> to vector<16x128xf32>
      %25 = arith.subf %24, %21 : vector<16x128xf32>
      %cst_20 = arith.constant dense<0x7F800000> : vector<16xf32>
      %26 = vector.multi_reduction <minimumf>, %25, %cst_20 [1] : vector<16x128xf32> to vector<16xf32>
      %27 = vector.shape_cast %26 : vector<16xf32> to vector<16x1xf32>
      %cst_21 = arith.constant 2.000000e+00 : f32
      %28 = vector.broadcast %cst_21 : f32 to vector<16x1xf32>
      %29 = arith.mulf %28, %27 : vector<16x1xf32>
      %30 = arith.addf %22, %29 : vector<16x1xf32>
      %cst_22 = arith.constant 0.000000e+00 : f32
      %31 = vector.broadcast %cst_22 : f32 to vector<16x1xf32>
      %32 = arith.maximumf %30, %31 : vector<16x1xf32>
      %33 = math.sqrt %32 : vector<16x1xf32>
      %34 = vector.extract_strided_slice %21 {offsets = [0, 8], sizes = [16, 1], strides = [1, 1]} : vector<16x128xf32> to vector<16x1xf32>
      %c0_23 = arith.constant 0 : index
      %35 = memref.load %arg5[%c0_23] : memref<1xf32, #tpu.memory_space<smem>>
      %36 = vector.broadcast %35 : f32 to vector<16x1xf32>
      %37 = arith.addf %34, %36 : vector<16x1xf32>
      %cst_24 = arith.constant 1.000000e-18 : f32
      %38 = vector.broadcast %cst_24 : f32 to vector<16x1xf32>
      %39 = arith.addf %33, %38 : vector<16x1xf32>
      %40 = math.exp %37 : vector<16x1xf32>
      %41 = arith.mulf %39, %40 : vector<16x1xf32>
      %c0_25 = arith.constant 0 : index
      %c0_26 = arith.constant 0 : index
      %42 = vector.load %arg6[%c0_25, %c0_26] : memref<16x1xf32, #tpu.memory_space<vmem>>, vector<16x1xf32>
      tpu.vector_store %arg6[%c0_25, %c0_26], %41 {strides = array<i32>} : memref<16x1xf32, #tpu.memory_space<vmem>>, vector<16x1xf32>,
    } else {
    }
    return
  }
  func.func @transform_0(%arg0: i32, %arg1: i32) -> (i32, i32) {
    %c0_i32 = arith.constant 0 : i32
    return %arg0, %arg1 : i32, i32
  }
  func.func @transform_1(%arg0: i32, %arg1: i32) -> (i32, i32) {
    %c0_i32 = arith.constant 0 : i32
    %c0_i32_0 = arith.constant 0 : i32
    %c0_i32_1 = arith.constant 0 : i32
    return %c0_i32, %c0_i32_0 : i32, i32
  }
  func.func @transform_2(%arg0: i32, %arg1: i32) -> (i32, i32) {
    %c0_i32 = arith.constant 0 : i32
    %c0_i32_0 = arith.constant 0 : i32
    %c0_i32_1 = arith.constant 0 : i32
    return %c0_i32, %c0_i32_0 : i32, i32
  }
  func.func @transform_3(%arg0: i32, %arg1: i32) -> i32 {
    %c0_i32 = arith.constant 0 : i32
    %c0_i32_0 = arith.constant 0 : i32
    return %c0_i32 : i32
  }
  func.func @transform_4(%arg0: i32, %arg1: i32) -> (i32, i32) {
    %c0_i32 = arith.constant 0 : i32
    %c0_i32_0 = arith.constant 0 : i32
    return %arg0, %c0_i32 : i32, i32
  }
}

</mosaic_0001>

<bundles_post_ra>
// kernel: tpu_custom_call.1
= control target key start
LH: loop header
LB: loop body
LE: loop exit
PB: predicated region body
PF: predicated region fallthrough
CT: control target
= control target key end

     0   :  { %10 = vsyncpa [#allocation6], 0  ;;  %s404_s0 = inlined_call_operand.hbm [shape: f32[16,128], index: 0, kind: input, shape index: {}]   ;;  %s405_s1 = inlined_call_operand.hbm [shape: f32[128,128], index: 1, kind: input, shape index: {}]   ;;  %s406_s2 = inlined_call_operand.vmem [shape: f32[1,128], index: 2, kind: input, shape index: {}]   ;;  %s407_s3 = inlined_call_operand.<no memory space> [shape: f32[1], index: 3, kind: input, shape index: {}]   ;;  %s408_s4 = inlined_call_operand.vmem [shape: f32[16,1], index: 4, kind: output, shape index: {}]  }
   0x1   :  { %11 = vsyncpa [#allocation8], 0  ;;  %s349_s15 = smov [#allocation5]  }
   0x2   :  { %s17_s16 = sshll.u32 %s349_s15, 4  ;;  %s18_s16 = int_to_ptr.vmem [resolvable:$true] %s17_s16 }
   0x3   :  { %s313_s17 = scalar_lea.vmem %s18_s16, 256  ;;  %p318_p1 = scmp.lt.s32.totalorder %s18_s16, %s18_s16 }
   0x4   :  { %p314_p0 = scmp.ne.s32.totalorder %s18_s16, %s313_s17  ;;  %p319_p2 = scmp.lt.s32.totalorder %s313_s17, %s313_s17 }
   0x6   :  { %p320_p3 = por %p319_p2, %p318_p1 }
   0x8   :  { %p321_p4 = pnand %p320_p3, %p314_p0 }
   0xa   :  { %324 = shalt.err (!%p321_p4)
}
   0xb   :  { %s350_s18 = smov 128   ;;  %s351_s19 = smov 8  }
   0xc   :  { %23 = dma.hbm_to_vmem [thread:$0]  %s404_s0, 256, %s18_s16, [#allocation6], %s350_s18, %s350_s18, %s351_s19  }
   0xd   :  { %s352_s22 = smov [#allocation7]  }
   0xe   :  { %s29_s23 = sshll.u32 %s352_s22, 4  ;;  %s30_s23 = int_to_ptr.vmem [resolvable:$true] %s29_s23 }
   0xf   :  { %s333_s24 = scalar_lea.vmem %s30_s23, 2048  ;;  %p338_p6 = scmp.lt.s32.totalorder %s30_s23, %s30_s23 }
  0x10   :  { %p334_p5 = scmp.ne.s32.totalorder %s30_s23, %s333_s24  ;;  %p339_p7 = scmp.lt.s32.totalorder %s333_s24, %s333_s24 }
  0x12   :  { %p340_p8 = por %p339_p7, %p338_p6 }
  0x14   :  { %p341_p9 = pnand %p340_p8, %p334_p5 }
  0x16   :  { %344 = shalt.err (!%p341_p9)
}
  0x17   :  { %35 = dma.hbm_to_vmem [thread:$0]  %s405_s1, 2048, %s30_s23, [#allocation8], %s350_s18, %s350_s18, %s351_s19  }
  0x18   :  { %345 = dma.done.wait [#allocation6], 256  }
  0x19   :  { %346 = vsyncadd [#allocation6], 4294967040 }
  0x1a   :  { %347 = dma.done.wait [#allocation8], 2048  }
  0x1b   :  { %348 = vsyncadd [#allocation8], 4294965248  ;;  %v74_v0 = vld [vmem:[#allocation7 + $0x78] sm:$0xff]  ;;  %v73_v1 = vld [vmem:[#allocation7 + $0x70] sm:$0xff]  ;;  %vm52_vm0 = vcmask 7168   ;;  %v353_v20 = vmov 0.0   ;;  %v210_v28 = vstv %s407_s3 }
  0x1c   :  { %256 = vmatprep.subr.mxu0 %v74_v0  ;;  %v72_v2 = vld [vmem:[#allocation7 + $0x68] sm:$0xff]  ;;  %v71_v3 = vld [vmem:[#allocation7 + $0x60] sm:$0xff]  ;;  %v55_v4 = vld [vmem:[#allocation5] sm:$0xff]  ;;  %53 = vst.msk [vmem:[#allocation3] sm:$0xff] %vm52_vm0, %v353_v20  ;;  %s354_s29 = smov 120  }
  0x1d   :  { %257 = vmatpush3.msra.mxu0 %v74_v0  ;;  %v70_v5 = vld [vmem:[#allocation7 + $0x58] sm:$0xff]  ;;  %288 = vmatprep.mubr.f32.mxu0 %v55_v4  ;;  %v158_v6 = vmul.f32 %v55_v4, %v55_v4  ;;  %v69_v8 = vld [vmem:[#allocation7 + $0x50] sm:$0xff]  ;;  %v68_v10 = vld [vmem:[#allocation7 + $0x48] sm:$0xff]  ;;  %54 = vst.msk [vmem:[#allocation3 + $0x8] sm:$0xff] %vm52_vm0, %v353_v20 }
  0x1e   :  { %258 = vmatprep.subr.mxu0 %v73_v1  ;;  %v56_v7 = vld [vmem:[#allocation5 + $0x8] sm:$0xff]  ;;  %v67_v11 = vld [vmem:[#allocation7 + $0x40] sm:$0xff]  ;;  %v65_v13 = vld [vmem:[#allocation7 + $0x30] sm:$0xff] }
  0x1f   :  { %259 = vmatpush3.msra.mxu0 %v73_v1  ;;  %160 = vadd.xlane.f32.xlu0 %v158_v6  ;;  %v159_v9 = vmul.f32 %v56_v7, %v56_v7  ;;  %v66_v12 = vld [vmem:[#allocation7 + $0x38] sm:$0xff]  ;;  %v64_v14 = vld [vmem:[#allocation7 + $0x28] sm:$0xff]  ;;  %v63_v15 = vld [vmem:[#allocation7 + $0x20] sm:$0xff] }
  0x20   :  { %260 = vmatprep.subr.mxu0 %v72_v2  ;;  %v62_v16 = vld [vmem:[#allocation7 + $0x18] sm:$0xff]  ;;  %v61_v17 = vld [vmem:[#allocation7 + $0x10] sm:$0xff]  ;;  %v60_v18 = vld [vmem:[#allocation7 + $0x8] sm:$0xff] }
  0x21   :  { %261 = vmatpush3.msra.mxu0 %v72_v2  ;;  %v59_v19 = vld [vmem:[#allocation7] sm:$0xff] }
  0x22   :  { %262 = vmatprep.subr.mxu0 %v71_v3  ;;  %v237_v30 = vld [vmem:[%s406_s2] ss:$0 sm:$0xff] }
  0x23   :  { %263 = vmatpush3.msra.mxu0 %v71_v3  ;;  %162 = vadd.xlane.f32.xlu0 %v159_v9  ;;  %v156_v21 = vld [vmem:[#allocation3] sm:$0xff] }
  0x24   :  { %264 = vmatprep.subr.mxu0 %v70_v5  ;;  %v157_v24 = vld [vmem:[#allocation3 + $0x8] sm:$0xff] }
  0x25   :  { %265 = vmatpush3.msra.mxu0 %v70_v5 }
  0x26   :  { %266 = vmatprep.subr.mxu0 %v69_v8 }
  0x27   :  { %267 = vmatpush3.msra.mxu0 %v69_v8 }
  0x28   :  { %268 = vmatprep.subr.mxu0 %v68_v10 }
  0x29   :  { %269 = vmatpush3.msra.mxu0 %v68_v10 }
  0x2a   :  { %270 = vmatprep.subr.mxu0 %v67_v11 }
  0x2b   :  { %271 = vmatpush3.msra.mxu0 %v67_v11 }
  0x2c   :  { %272 = vmatprep.subr.mxu0 %v66_v12 }
  0x2d   :  { %273 = vmatpush3.msra.mxu0 %v66_v12 }
  0x2e   :  { %274 = vmatprep.subr.mxu0 %v65_v13 }
  0x2f   :  { %275 = vmatpush3.msra.mxu0 %v65_v13 }
  0x30   :  { %276 = vmatprep.subr.mxu0 %v64_v14 }
  0x31   :  { %277 = vmatpush3.msra.mxu0 %v64_v14 }
  0x32   :  { %278 = vmatprep.subr.mxu0 %v63_v15 }
  0x33   :  { %279 = vmatpush3.msra.mxu0 %v63_v15 }
  0x34   :  { %280 = vmatprep.subr.mxu0 %v62_v16 }
  0x35   :  { %281 = vmatpush3.msra.mxu0 %v62_v16 }
  0x36   :  { %282 = vmatprep.subr.mxu0 %v61_v17 }
  0x37   :  { %283 = vmatpush3.msra.mxu0 %v61_v17 }
  0x38   :  { %284 = vmatprep.subr.mxu0 %v60_v18 }
  0x39   :  { %285 = vmatpush3.msra.mxu0 %v60_v18 }
  0x3a   :  { %286 = vmatprep.subr.mxu0 %v59_v19 }
  0x3b   :  { %287 = vmatpush3.msra.mxu0 %v59_v19 }
  0x3c   :  { %289 = vmatmul.mubr.f32.vlgmr.msra.gmra.mxu0 %v56_v7 }
  0xa8   :  { %v161_v22 = vpop.xlane.xlu0 %160 }
  0xa9   :  { %v164_v23 = vadd.f32 %v161_v22, %v156_v21 }
  0xab   :  { %167 = vst.msk [vmem:[#allocation3] sm:$0xff] %vm52_vm0, %v164_v23 }
  0xac   :  { %v163_v25 = vpop.xlane.xlu0 %162 }
  0xad   :  { %v165_v26 = vadd.f32 %v163_v25, %v157_v24 }
  0xaf   :  { %168 = vst.msk [vmem:[#allocation3 + $0x8] sm:$0xff] %vm52_vm0, %v165_v26 }
  0xb2   :  { %v174_v40 = vld [vmem:[#allocation3] sm:$0xff] }
  0xb6   :  { %v175_v45 = vld [vmem:[#allocation3 + $0x8] sm:$0xff] }
  0xfc   :  { %v290_v27 = vpop.f32.mrf.mxu0 }
  0xfd   :  { %v212_v33 = vadd.f32 %v290_v27, %v210_v28  ;;  %v184_v35 = vsub.f32 %v237_v30, %v290_v27 }
  0xfe   :  { %v143_v29 = vpop.f32.mrf.mxu0 }
  0xff   :  { %v211_v31 = vadd.f32 %v210_v28, %v143_v29  ;;  %v183_v32 = vsub.f32 %v237_v30, %v143_v29  ;;  %v217_v36 = vmul.f32 1.442695, %v212_v33 }
 0x101   :  { %v215_v34 = vmul.f32 1.442695, %v211_v31  ;;  %185 = vmin.xlane.f32.xlu1 %v183_v32 }
 0x103   :  { %297 = vpow2.f32 %v215_v34 }
 0x104   :  { %299 = vpow2.f32 %v217_v36 }
 0x105   :  { %187 = vmin.xlane.f32.xlu1 %v184_v35 }
 0x110   :  { %v298_v37 = vpop.eup %297 }
 0x111   :  { %221 = vrot.lane.b32.xlu0 %v298_v37, %s354_s29  ;;  %v300_v38 = vpop.eup %299 }
 0x116   :  { %223 = vrot.lane.b32.xlu1 %v300_v38, %s354_s29 }
 0x183   :  { %v222_v56 = vpop.permute.xlu0 %221 }
 0x18a   :  { %v186_v39 = vpop.xlane.xlu1 %185 }
 0x18b   :  { %v189_v41 = vmul.f32 2.0, %v186_v39 }
 0x18d   :  { %v191_v42 = vadd.f32 %v189_v41, %v174_v40 }
 0x18e   :  { %v188_v43 = vpop.xlane.xlu1 %187 }
 0x18f   :  { %v193_v44 = vmax.f32 %v191_v42, 0.0  ;;  %v190_v46 = vmul.f32 2.0, %v188_v43 }
 0x191   :  { %301 = vrsqrt.f32 %v193_v44  ;;  %v192_v47 = vadd.f32 %v190_v46, %v175_v45  ;;  %vm197_vm1 = vcmp.eq.f32.partialorder %v193_v44, inf  ;;  %v200_v51 = vand.u32 2147483648, %v193_v44 }
 0x192   :  { %vm199_vm2 = vcmp.eq.f32.partialorder %v193_v44, 0.0  ;;  %v224_v63 = vpop.permute.xlu1 %223 }
 0x193   :  { %v194_v48 = vmax.f32 %v192_v47, 0.0 }
 0x195   :  { %303 = vrsqrt.f32 %v194_v48  ;;  %vm204_vm3 = vcmp.eq.f32.partialorder %v194_v48, inf  ;;  %v207_v59 = vand.u32 2147483648, %v194_v48  ;;  %vm206_vm4 = vcmp.eq.f32.partialorder %v194_v48, 0.0 }
 0x19e   :  { %v302_v49 = vpop.eup %301 }
 0x19f   :  { %v196_v50 = vmul.f32 %v302_v49, %v193_v44 }
 0x1a1   :  { %v198_v52 = vsel %vm197_vm1, %v193_v44, %v196_v50 }
 0x1a2   :  { %v201_v53 = vsel %vm199_vm2, %v200_v51, %v198_v52  ;;  %v304_v54 = vpop.eup %303 }
 0x1a3   :  { %v213_v55 = vadd.f32 1e-18, %v201_v53  ;;  %v203_v57 = vmul.f32 %v304_v54, %v194_v48 }
 0x1a5   :  { %v227_v58 = vmul.f32 %v222_v56, %v213_v55  ;;  %v205_v60 = vsel %vm204_vm3, %v194_v48, %v203_v57 }
 0x1a6   :  { %v208_v61 = vsel %vm206_vm4, %v207_v59, %v205_v60 }
 0x1a7   :  { %229 = vst.msk [vmem:[%s408_s4] sm:$0xff] %vm52_vm0, %v227_v58  ;;  %v214_v62 = vadd.f32 1e-18, %v208_v61 }
 0x1a9   :  { %v228_v0 = vmul.f32 %v224_v63, %v214_v62 }
 0x1ab   :  { %230 = vst.msk [vmem:[%s408_s4 + $0x8] sm:$0xff] %vm52_vm0, %v228_v0 }
 0x1ac   :  { %235 = vsyncpa [#allocation6], 1 }
 0x1ad   :  { %236 = vsyncpa [#allocation8], 1 }

</bundles_post_ra>
